<compile_context>
chip_gen: v7x
topology: tpu7x:2x2x1
jax: 0.10.0
libtpu: 0.0.40
codegen_flags: <defaults>
</compile_context>

<pallas_src>
import functools

import jax
import jax.numpy as jnp
from jax.experimental import pallas as pl
from jax.experimental.pallas import tpu as pltpu


def _round_up(x, m):
    return ((x + m - 1) // m) * m


def _tpu_vmem_capacity_bytes():
    try:
        info = pltpu.get_tpu_info()
        cap = getattr(info, "vmem_capacity_bytes", None)
        if cap:
            return int(cap)
    except Exception:
        pass
    return 64 * 1024 * 1024  # conservative fallback (v7x per-core VMEM)


def _choose_layout(num_nodes):
    """Padded node count + (tm, tk) tiles.  Guarantees:
         * n_pad % tm == 0 and n_pad % tk == 0,
         * n_pad // tm >= 2 (keeps both v7x TensorCores busy),
         * large tiles (tm<=1024, tk<=2048) so the A stream is not
           per-grid-step-overhead dominated."""
    n_pad = _round_up(max(num_nodes, 128), 128)
    if n_pad > 2048:
        n_pad = _round_up(n_pad, 2048)
        tk = 2048
    else:
        tk = n_pad
    tm = n_pad
    for c in (1024, 512, 256, 128, 64):
        if c < n_pad and n_pad % c == 0:
            tm = c
            break
    return n_pad, tm, tk


# ---------------------------------------------------------------------------
# Pallas kernel: streamed aggregation matmul + epilogue add/ReLU
#   acc   += A_norm[i_tile, k_tile] @ XWl[k_tile, :]        (reduction over k)
#   out_i  = acc + R[i_tile, :]  [+ ReLU]                   (k == last)
# ---------------------------------------------------------------------------
def sage_layer_kernel(a_ref, xwl_ref, r_ref, o_ref, acc_ref, *,
                      apply_relu, tk, xwl_resident):
    k = pl.program_id(1)

    @pl.when(k == 0)
    def _():
        acc_ref[...] = jnp.zeros_like(acc_ref)

    if xwl_resident:
        # Whole XWl lives in VMEM for the entire grid; slice the k-th chunk.
        start = pl.multiple_of(k * tk, tk)
        xwl = xwl_ref[pl.ds(start, tk), :]
    else:
        xwl = xwl_ref[...]

    # bf16 MXU matmul, f32 accumulation.
    acc_ref[...] += jnp.dot(a_ref[...], xwl,
                            preferred_element_type=jnp.float32)

    @pl.when(k == pl.num_programs(1) - 1)
    def _():
        out = acc_ref[...] + r_ref[...]          # root term + bias (f32)
        if apply_relu:
            out = jnp.maximum(out, 0.0)
        o_ref[...] = out.astype(o_ref.dtype)


def sage_conv_layer(a_pad, xwl, r, *, apply_relu, out_dtype, tm, tk,
                    xwl_resident, vmem_limit):
    """One SAGEConv layer (inputs already padded; N multiple of tm and tk)."""
    n_pad = a_pad.shape[0]
    f_out_p = xwl.shape[1]
    grid = (n_pad // tm, n_pad // tk)

    if xwl_resident:
        xwl_spec = pl.BlockSpec((n_pad, f_out_p), lambda i, k: (0, 0))
        xwl_bytes = n_pad * f_out_p * 2
    else:
        xwl_spec = pl.BlockSpec((tk, f_out_p), lambda i, k: (k, 0))
        # streamed operand is re-read once per i tile
        xwl_bytes = (n_pad // tm) * n_pad * f_out_p * 2

    flops = 2 * n_pad * n_pad * f_out_p + n_pad * f_out_p
    bytes_accessed = (n_pad * n_pad * 2                     # A (bf16)
                      + xwl_bytes                           # XWl (bf16)
                      + n_pad * f_out_p * 4                 # R (f32)
                      + n_pad * f_out_p * jnp.dtype(out_dtype).itemsize)

    kernel = functools.partial(sage_layer_kernel, apply_relu=apply_relu,
                               tk=tk, xwl_resident=xwl_resident)
    return pl.pallas_call(
        kernel,
        out_shape=jax.ShapeDtypeStruct((n_pad, f_out_p), out_dtype),
        grid=grid,
        in_specs=[
            pl.BlockSpec((tm, tk), lambda i, k: (i, k)),        # A_norm tile
            xwl_spec,                                           # X @ W_l
            pl.BlockSpec((tm, f_out_p), lambda i, k: (i, 0)),   # X @ W_r + b
        ],
        out_specs=pl.BlockSpec((tm, f_out_p), lambda i, k: (i, 0)),
        scratch_shapes=[pltpu.VMEM((tm, f_out_p), jnp.float32)],
        compiler_params=pltpu.CompilerParams(
            dimension_semantics=("parallel", "arbitrary"),
            vmem_limit_bytes=vmem_limit),
        cost_estimate=pl.CostEstimate(
            flops=flops, transcendentals=0, bytes_accessed=bytes_accessed),
    )(a_pad, xwl, r)


# ---------------------------------------------------------------------------
# Glue: parameter init, dense normalized adjacency, padding, layer stacking
# ---------------------------------------------------------------------------
def init_sage_params(key, in_channels, hidden_channels, out_channels, num_layers):
    dims = [in_channels] + [hidden_channels] * (num_layers - 1) + [out_channels]
    params = []
    for layer in range(num_layers):
        f_in, f_out = dims[layer], dims[layer + 1]
        key, k1, k2, k3 = jax.random.split(key, 4)
        scale = 1.0 / jnp.sqrt(jnp.float32(f_in))
        w_l = jax.random.uniform(k1, (f_in, f_out), jnp.float32, -scale, scale)
        w_r = jax.random.uniform(k2, (f_in, f_out), jnp.float32, -scale, scale)
        b = jax.random.uniform(k3, (1, f_out), jnp.float32, -scale, scale)
        params.append((w_l, w_r, b))
    return params


def build_normalized_adjacency(edge_index, num_nodes):
    """A_norm[i, j] = (#edges j->i) / max(in_degree(i), 1)  (mean aggregation)."""
    src, dst = edge_index[0], edge_index[1]
    a = jnp.zeros((num_nodes, num_nodes), jnp.float32)
    a = a.at[dst, src].add(1.0)
    deg = jnp.maximum(a.sum(axis=1, keepdims=True), 1.0)
    return a / deg


def _pad2(arr, rows, cols, dtype):
    out = jnp.zeros((rows, cols), dtype)
    return out.at[:arr.shape[0], :arr.shape[1]].set(arr.astype(dtype))


def sage_forward(params, x, edge_index, num_nodes):
    n_pad, tm, tk = _choose_layout(num_nodes)

    vmem_cap = _tpu_vmem_capacity_bytes()
    vmem_limit = int(min(vmem_cap * 3 // 4, 96 * 1024 * 1024))
    residency_budget = vmem_cap // 4        # generation-aware (16 MiB on v7x)

    a_norm = build_normalized_adjacency(edge_index, num_nodes)
    a_pad = _pad2(a_norm, n_pad, n_pad, jnp.bfloat16)

    f_in0 = x.shape[1]
    h = _pad2(x, n_pad, _round_up(f_in0, 128), jnp.bfloat16)

    num_layers = len(params)
    for i, (w_l, w_r, b) in enumerate(params):
        last = i == num_layers - 1
        f_in, f_out = w_l.shape
        f_in_p, f_out_p = _round_up(f_in, 128), _round_up(f_out, 128)
        wl_p = _pad2(w_l, f_in_p, f_out_p, jnp.bfloat16)
        wr_p = _pad2(w_r, f_in_p, f_out_p, jnp.bfloat16)
        b_p = _pad2(b, 1, f_out_p, jnp.float32)

        # Hoisted (cheap, O(N f^2)) weight matmuls done by XLA outside the kernel.
        xwl = jnp.dot(h, wl_p,
                      preferred_element_type=jnp.float32).astype(jnp.bfloat16)
        r = jnp.dot(h, wr_p, preferred_element_type=jnp.float32) + b_p

        # VMEM residency gate for XWl (count double-buffering).
        xwl_resident = (2 * n_pad * f_out_p * 2) <= residency_budget

        h = sage_conv_layer(
            a_pad, xwl, r,
            apply_relu=not last,
            out_dtype=jnp.float32 if last else jnp.bfloat16,
            tm=tm, tk=tk, xwl_resident=xwl_resident, vmem_limit=vmem_limit)
        # TODO(synk): F.dropout(p=0.5, training=True) is stochastic; applied as
        # identity (eval-mode semantics) here.

    out_channels = params[-1][0].shape[1]
    return h[:num_nodes, :out_channels]


# ---------------------------------------------------------------------------
# Reference (pure JAX, mirrors the hoisted bf16/f32-accumulate math)
# ---------------------------------------------------------------------------
def sage_forward_ref(params, x, edge_index, num_nodes):
    a = build_normalized_adjacency(edge_index, num_nodes).astype(jnp.bfloat16)
    h = x.astype(jnp.bfloat16)
    num_layers = len(params)
    for i, (w_l, w_r, b) in enumerate(params):
        xwl = jnp.dot(h, w_l.astype(jnp.bfloat16),
                      preferred_element_type=jnp.float32).astype(jnp.bfloat16)
        r = jnp.dot(h, w_r.astype(jnp.bfloat16),
                    preferred_element_type=jnp.float32) + b
        out = jnp.dot(a, xwl, preferred_element_type=jnp.float32) + r
        if i != num_layers - 1:
            out = jnp.maximum(out, 0.0)
            h = out.astype(jnp.bfloat16)
        else:
            h = out
    return h


if __name__ == "__main__":
    num_nodes = 16
    num_edges = 48
    in_channels, hidden_channels, out_channels = 8, 32, 16
    num_layers = 3

    key = jax.random.PRNGKey(0)
    kx, ke_src, ke_dst, kp = jax.random.split(key, 4)

    x = jax.random.normal(kx, (num_nodes, in_channels), jnp.float32)
    edge_index = jnp.stack(
        [
            jax.random.randint(ke_src, (num_edges,), 0, num_nodes),
            jax.random.randint(ke_dst, (num_edges,), 0, num_nodes),
        ],
        axis=0,
    )  # [2, E], row0 = source, row1 = target

    params = init_sage_params(kp, in_channels, hidden_channels, out_channels,
                              num_layers)

    out = sage_forward(params, x, edge_index, num_nodes)
    out = jax.block_until_ready(out)

    ref = sage_forward_ref(params, x, edge_index, num_nodes)
    assert out.shape == (num_nodes, out_channels)
    assert jnp.allclose(out, ref, atol=1e-3, rtol=1e-3), (
        float(jnp.max(jnp.abs(out - ref))))

    print("KERNEL_OK")
</pallas_src>

<mosaic_0001>
module attributes {stable_mosaic.version = 11 : i64} {
  func.func @sage_layer_kernel(%arg0: i32, %arg1: i32, %arg2: memref<64x128xbf16, #tpu.memory_space<vmem>>, %arg3: memref<128x128xbf16, #tpu.memory_space<vmem>>, %arg4: memref<64x128xf32, #tpu.memory_space<vmem>>, %arg5: memref<64x128xbf16, #tpu.memory_space<vmem>>, %arg6: memref<64x128xf32, #tpu.memory_space<vmem>>) attributes {dimension_semantics = [#tpu.dimension_semantics<parallel>, #tpu.dimension_semantics<arbitrary>], iteration_bounds = array<i64: 2, 1>, scalar_prefetch = 0 : i64, scratch_operands = 1 : i64, tpu.core_type = #tpu.core_type<tc>, window_params = [{transform_indices = @transform_0, window_bounds = array<i64: 64, 128>}, {pipeline_mode = #tpu.pipeline_mode<synchronous>, transform_indices = @transform_1, window_bounds = array<i64: 128, 128>}, {transform_indices = @transform_2, window_bounds = array<i64: 64, 128>}, {transform_indices = @transform_3, window_bounds = array<i64: 64, 128>}]} {
    %c0_i32 = arith.constant 0 : i32
    %0 = arith.cmpi eq, %arg1, %c0_i32 : i32
    %1 = arith.extui %0 : i1 to i32
    %c0_i32_0 = arith.constant 0 : i32
    %2 = arith.cmpi ne, %1, %c0_i32_0 : i32
    scf.if %2 {
      %cst_9 = arith.constant 0.000000e+00 : f32
      %15 = vector.broadcast %cst_9 : f32 to vector<64x128xf32>
      %c0_10 = arith.constant 0 : index
      %c0_11 = arith.constant 0 : index
      %16 = vector.load %arg6[%c0_10, %c0_11] : memref<64x128xf32, #tpu.memory_space<vmem>>, vector<64x128xf32>
      tpu.vector_store %arg6[%c0_10, %c0_11], %15 {strides = array<i32>} : memref<64x128xf32, #tpu.memory_space<vmem>>, vector<64x128xf32>,
    } else {
    }
    %c128_i32 = arith.constant 128 : i32
    %3 = arith.muli %arg1, %c128_i32 : i32
    %4 = tpu.assume_multiple %3, 128 : i32
    %5 = arith.index_cast %4 : i32 to index
    %c0 = arith.constant 0 : index
    %6 = vector.load %arg3[%5, %c0] : memref<128x128xbf16, #tpu.memory_space<vmem>>, vector<128x128xbf16>
    %c0_1 = arith.constant 0 : index
    %c0_2 = arith.constant 0 : index
    %7 = vector.load %arg6[%c0_1, %c0_2] : memref<64x128xf32, #tpu.memory_space<vmem>>, vector<64x128xf32>
    %c0_3 = arith.constant 0 : index
    %c0_4 = arith.constant 0 : index
    %8 = vector.load %arg2[%c0_3, %c0_4] : memref<64x128xbf16, #tpu.memory_space<vmem>>, vector<64x128xbf16>
    %cst = arith.constant dense<0.000000e+00> : vector<64x128xf32>
    %9 = tpu.matmul %8, %6, %cst {dimension_numbers = #tpu.dot_dimension_numbers<[1], [0], [0], [1], [0, 0, 1, 1], [], []>} : vector<64x128xbf16>, vector<128x128xbf16>, vector<64x128xf32> -> vector<64x128xf32>
    %10 = arith.addf %7, %9 : vector<64x128xf32>
    %c0_5 = arith.constant 0 : index
    %c0_6 = arith.constant 0 : index
    %11 = vector.load %arg6[%c0_5, %c0_6] : memref<64x128xf32, #tpu.memory_space<vmem>>, vector<64x128xf32>
    tpu.vector_store %arg6[%c0_5, %c0_6], %10 {strides = array<i32>} : memref<64x128xf32, #tpu.memory_space<vmem>>, vector<64x128xf32>,
    %c0_i32_7 = arith.constant 0 : i32
    %12 = arith.cmpi eq, %arg1, %c0_i32_7 : i32
    %13 = arith.extui %12 : i1 to i32
    %c0_i32_8 = arith.constant 0 : i32
    %14 = arith.cmpi ne, %13, %c0_i32_8 : i32
    scf.if %14 {
      %c0_9 = arith.constant 0 : index
      %c0_10 = arith.constant 0 : index
      %15 = vector.load %arg6[%c0_9, %c0_10] : memref<64x128xf32, #tpu.memory_space<vmem>>, vector<64x128xf32>
      %c0_11 = arith.constant 0 : index
      %c0_12 = arith.constant 0 : index
      %16 = vector.load %arg4[%c0_11, %c0_12] : memref<64x128xf32, #tpu.memory_space<vmem>>, vector<64x128xf32>
      %17 = arith.addf %15, %16 : vector<64x128xf32>
      %cst_13 = arith.constant 0.000000e+00 : f32
      %18 = vector.broadcast %cst_13 : f32 to vector<64x128xf32>
      %19 = arith.maximumf %17, %18 : vector<64x128xf32>
      %20 = arith.truncf %19 : vector<64x128xf32> to vector<64x128xbf16>
      %c0_14 = arith.constant 0 : index
      %c0_15 = arith.constant 0 : index
      %21 = vector.load %arg5[%c0_14, %c0_15] : memref<64x128xbf16, #tpu.memory_space<vmem>>, vector<64x128xbf16>
      tpu.vector_store %arg5[%c0_14, %c0_15], %20 {strides = array<i32>} : memref<64x128xbf16, #tpu.memory_space<vmem>>, vector<64x128xbf16>,
    } else {
    }
    return
  }
  func.func @transform_0(%arg0: i32, %arg1: i32) -> (i32, i32) {
    %c0_i32 = arith.constant 0 : i32
    return %arg0, %arg1 : i32, i32
  }
  func.func @transform_1(%arg0: i32, %arg1: i32) -> (i32, i32) {
    %c0_i32 = arith.constant 0 : i32
    %c0_i32_0 = arith.constant 0 : i32
    %c0_i32_1 = arith.constant 0 : i32
    return %c0_i32, %c0_i32_0 : i32, i32
  }
  func.func @transform_2(%arg0: i32, %arg1: i32) -> (i32, i32) {
    %c0_i32 = arith.constant 0 : i32
    %c0_i32_0 = arith.constant 0 : i32
    return %arg0, %c0_i32 : i32, i32
  }
  func.func @transform_3(%arg0: i32, %arg1: i32) -> (i32, i32) {
    %c0_i32 = arith.constant 0 : i32
    %c0_i32_0 = arith.constant 0 : i32
    return %arg0, %c0_i32 : i32, i32
  }
}

</mosaic_0001>

<bundles_post_ra>
// kernel: tpu_custom_call.1
= control target key start
LH: loop header
LB: loop body
LE: loop exit
PB: predicated region body
PF: predicated region fallthrough
CT: control target
= control target key end

     0   :  { %s1392_s0 = inlined_call_operand.hbm [shape: bf16[128,128], index: 0, kind: input, shape index: {}]   ;;  %s1393_s1 = inlined_call_operand.hbm [shape: bf16[128,128], index: 1, kind: input, shape index: {}]   ;;  %s1394_s2 = inlined_call_operand.hbm [shape: f32[128,128], index: 2, kind: input, shape index: {}]   ;;  %s1395_s3 = inlined_call_operand.hbm [shape: bf16[128,128], index: 3, kind: output, shape index: {}]  }
   0x1   :  { %1402 = sst [smem:[#allocation14_spill]] %s1392_s0 }
   0x2   :  { %1403 = sst [smem:[#allocation15_spill]] %s1394_s2 }
   0x3   :  { %8 = vsyncpa [#allocation4], 0 }
   0x4   :  { %10 = vsyncpa [#allocation4 + $0x1], 0 }
   0x5   :  { %11 = vsyncpa [#allocation7], 0 }
   0x6   :  { %12 = vsyncpa [#allocation5], 0 }
   0x7   :  { %14 = vsyncpa [#allocation5 + $0x1], 0  ;;  %s1099_s12 = smov 0   ;;  %s1101_s13 = smov 0  }
   0x8   :  { %s1103_s14 = smov 0   ;;  %s1105_s15 = smov 0  }
   0x9   :  { %s1107_s16 = smov 0   ;;  %s1109_s17 = smov 0  }
   0xa LB: > { %s32_s18 = sadd.s32 1, %s1063_s16  ;;  %s41_s19 = sadd.s32 1, %s1055_s14  ;;  %s1067_s17 = sphi %s1109_s17, %s20_s17   ;;  %s1063_s16 = sphi %s1107_s16, %s1426_s16   ;;  %s1059_s15 = sphi %s1105_s15, %s1425_s15   ;;  %s1055_s14 = sphi %s1103_s14, %s1424_s14   ;;  %s1051_s13 = sphi %s1101_s13, %s1423_s13   ;;  %s1047_s12 = sphi %s1099_s12, %s1422_s12  }
   0xb   : > { %p34_p0 = scmp.ge.s32.totalorder %s32_s18, 2  ;;  %p48_p1 = scmp.ne.s32.totalorder %s1055_s14, %s1051_s13 }
   0xc   : > { %p49_p2 = scmp.eq.s32.totalorder %s1067_s17, 0  ;;  %p819_p6 = scmp.lt.s32.totalorder %s1067_s17, 2 }
   0xd   : > { %s1428_s18 = smov (%p34_p0, %s32_s18), 0  ;;  %s164_s22 = sand.u32 1, %s1067_s17  }
   0xe   : > { %p1139_p3 = por %p49_p2, %p48_p1  ;;  %s36_s21 = ssub.s32 %s1063_s16, %s1428_s18 }
   0xf   : > { %p39_p5 = scmp.eq.s32.totalorder %s36_s21, 0  ;;  %s166_s23 = sand.u32 1, %s1055_s14  }
  0x10   : > { %s671_s25 = sshll.u32 %s166_s23, 5  ;;  %s707_s26 = sshll.u32 %s1063_s16, 9 }
  0x11   : > { %s1150_s24 = scalar_select %p39_p5, %s1055_s14, %s41_s19  }
  0x12   : > { %s1405_s0 = sld [smem:[#allocation14_spill]]  ;;  %s168_s30 = scalar_lea.vmem [#allocation3], %s671_s25 }
  0x13   : > { %s176_s4 = sshll.u32 %s168_s30, 4  ;;  %p1162_p7 = pnand %p819_p6, %p1139_p3  ;;  %s1158_s4 = int_to_ptr.vmem [resolvable:$true] %s176_s4 }
  0x14   : > { %s1166_s6 = sshll.u32 %s166_s23, 6  ;;  %s1168_s7 = scalar_lea.sflag [#allocation4], %s164_s22 }
  0x15   : > { %p891_p9 = pneg %p1162_p7 }
  0x18   : > { %s1156_s29 = scalar_lea.hbm %s1405_s0, %s707_s26  ;;  %s894_s11 = scalar_lea.hbm %s1405_s0, 1024 }
  0x19   : > { %s889_s8 = scalar_lea.hbm %s1156_s29, 512  ;;  %p895_p12 = scmp.lt.u32.totalorder %s1156_s29, %s1405_s0 }
  0x1a   : > { %p890_p8 = scmp.ne.s32.totalorder %s1156_s29, %s889_s8  ;;  %p896_p13 = scmp.lt.u32.totalorder %s894_s11, %s889_s8 }
  0x1b   : > { %p898_p2 = scmp.lt.u32.totalorder %s889_s8, %s1156_s29 }
  0x1c   : > { %p892_p10 = pnand %p891_p9, %p890_p8  ;;  %p897_p0 = por %p896_p13, %p895_p12 }
  0x1e   : > { %p893_p11 = pneg %p892_p10  ;;  %p899_p3 = por %p898_p2, %p897_p0 }
  0x20   : > { %p900_p5 = pnand %p899_p3, %p893_p11 }
  0x22   : > { %903 = shalt.err (!%p900_p5)
}
  0x23   : > { %s904_s21 = scalar_lea.vmem %s1158_s4, 512  ;;  %s1069_s22 = smov [#allocation3]  }
  0x24   : > { %p905_p6 = scmp.ne.s32.totalorder %s1158_s4, %s904_s21  ;;  %s909_s23 = sshll.u32 %s1069_s22, 4  ;;  %s910_s23 = int_to_ptr.vmem [resolvable:$false] %s909_s23 }
  0x25   : > { %s911_s25 = scalar_lea.vmem %s910_s23, 1024  ;;  %p912_p4 = scmp.lt.s32.totalorder %s1158_s4, %s910_s23 }
  0x26   : > { %p907_p8 = pnand %p905_p6, %p891_p9  ;;  %p913_p12 = scmp.lt.s32.totalorder %s911_s25, %s904_s21 }
  0x28   : > { %p908_p10 = pneg %p907_p8  ;;  %p914_p13 = por %p913_p12, %p912_p4 }
  0x2a   : > { %p915_p0 = pnand %p914_p13, %p908_p10 }
  0x2c   : > { %918 = shalt.err (!%p915_p0)
}
  0x2d   : > { %s1398_s26 = smov 64   ;;  %s1401_s27 = smov 4  }
  0x2e   : > { %810 = dma.hbm_to_vmem [thread:$0]  (!%p1162_p7), %s1156_s29, 512, %s1158_s4, %s1168_s7, %s1398_s26, %s1398_s26, %s1401_s27  }
  0x2f   : > { %s190_s28 = scalar_lea.vmem [#allocation8], %s1166_s6  ;;  %s1201_s8 = sadd.s32 4294967295, %s1067_s17  }
  0x30   : > { %s197_s30 = sshll.u32 %s190_s28, 4  ;;  %s667_s9 = sadd.s32 4294967294, %s1067_s17   ;;  %s1239_s30 = int_to_ptr.vmem [resolvable:$true] %s197_s30 }
  0x31   : > { %p54_p4 = scmp.ne.s32.totalorder %s1051_s13, %s1047_s12  ;;  %p1396_p11 = scmp.eq.s32.totalorder %s1201_s8, 0 }
  0x32   : > { %p125_p2 = scmp.eq.s32.totalorder %s1201_s8, 1  ;;  %p131_p3 = scmp.eq.s32.totalorder %s667_s9, 1 }
  0x33   : > { %p1210_p5 = por %p1396_p11, %p54_p4  ;;  %p668_p6 = scmp.ge.s32.totalorder %s1067_s17, 1 }
  0x34   : > { %p1218_p8 = por %p125_p2, %p48_p1  ;;  %p1222_p10 = por %p131_p3, %p54_p4 }
  0x35   : > { %s1407_s10 = scalar_select %p1210_p5, 1, 0 }
  0x36   : > { %s1408_s29 = scalar_select %p1218_p8, 1, 0 }
  0x37   : > { %s1409_s4 = scalar_select %p1222_p10, 1, 0 }
  0x38   : > { %p138_p12 = scmp.lt.s32.totalorder %s1067_s17, 3  ;;  %s708_s6 = sshll.u32 %s1063_s16, 10 }
  0x39   : > { %s1072_s19 = smov [#allocation6]   ;;  %s1411_s2 = sld [smem:[#allocation15_spill]] }
  0x3a   : > { %p1228_p13 = pnand %p668_p6, %p138_p12  ;;  %s150_s20 = sshll.u32 %s1072_s19, 4  ;;  %s1241_s20 = int_to_ptr.vmem [resolvable:$true] %s150_s20 }
  0x3c   : > { %s1410_s11 = scalar_select %p1228_p13, 1, 0 }
  0x3d   : > { %p803_p1 = pneg %p1228_p13 }
  0x3f   : > { %s1235_s23 = scalar_lea.hbm %s1411_s2, %s708_s6  ;;  %p1245_p0 = pnand %p803_p1, %p1396_p11 }
  0x40   : > { %s919_s28 = scalar_lea.hbm %s1235_s23, 1024  ;;  %s924_s19 = scalar_lea.hbm %s1411_s2, 2048 }
  0x41   : > { %p920_p4 = scmp.ne.s32.totalorder %s1235_s23, %s919_s28  ;;  %p925_p6 = scmp.lt.u32.totalorder %s1235_s23, %s1411_s2 }
  0x42   : > { %p926_p12 = scmp.lt.u32.totalorder %s924_s19, %s919_s28  ;;  %p928_p1 = scmp.lt.u32.totalorder %s919_s28, %s1235_s23 }
  0x43   : > { %p922_p2 = pnand %p920_p4, %p891_p9 }
  0x44   : > { %p927_p10 = por %p926_p12, %p925_p6 }
  0x45   : > { %p923_p3 = pneg %p922_p2 }
  0x46   : > { %p929_p11 = por %p928_p1, %p927_p10 }
  0x48   : > { %p930_p8 = pnand %p929_p11, %p923_p3 }
  0x4a   : > { %933 = shalt.err (!%p930_p8)
}
  0x4b   : > { %s934_s26 = scalar_lea.vmem %s1239_s30, 1024  ;;  %s1073_s9 = smov [#allocation8]  }
  0x4c   : > { %p935_p4 = scmp.ne.s32.totalorder %s1239_s30, %s934_s26  ;;  %s939_s6 = sshll.u32 %s1073_s9, 4  ;;  %s940_s6 = int_to_ptr.vmem [resolvable:$false] %s939_s6 }
  0x4d   : > { %s941_s21 = scalar_lea.vmem %s940_s6, 2048  ;;  %p942_p13 = scmp.lt.s32.totalorder %s1239_s30, %s940_s6 }
  0x4e   : > { %p937_p2 = pnand %p935_p4, %p891_p9  ;;  %p943_p6 = scmp.lt.s32.totalorder %s941_s21, %s934_s26 }
  0x50   : > { %p938_p5 = pneg %p937_p2  ;;  %p944_p12 = por %p943_p6, %p942_p13 }
  0x52   : > { %p945_p10 = pnand %p944_p12, %p938_p5 }
  0x54   : > { %948 = shalt.err (!%p945_p10)
}
  0x55   : > { %s1074_s28 = smov 128   ;;  %s1075_s19 = smov 8  }
  0x56   : > { %813 = dma.hbm_to_vmem [thread:$0]  (!%p1162_p7), %s1235_s23, 1024, %s1239_s30, %s1168_s7, %s1074_s28, %s1074_s28, %s1075_s19  }
  0x57   : > { %s949_s9 = scalar_lea.hbm %s1393_s1, 1024  ;;  %p951_p11 = pneg %p1245_p0 }
  0x58   : > { %p950_p9 = scmp.ne.s32.totalorder %s1393_s1, %s949_s9  ;;  %p956_p13 = scmp.lt.u32.totalorder %s949_s9, %s1393_s1 }
  0x5a   : > { %p952_p5 = pnand %p951_p11, %p950_p9 }
  0x5c   : > { %p953_p8 = pneg %p952_p5 }
  0x5e   : > { %p958_p3 = pnand %p956_p13, %p953_p8 }
  0x60   : > { %961 = shalt.err (!%p958_p3)
}
  0x61   : > { %s962_s5 = scalar_lea.vmem %s1241_s20, 1024  ;;  %p970_p2 = scmp.lt.s32.totalorder %s1241_s20, %s1241_s20 }
  0x62   : > { %p963_p7 = scmp.ne.s32.totalorder %s1241_s20, %s962_s5  ;;  %p971_p6 = scmp.lt.s32.totalorder %s962_s5, %s962_s5 }
  0x64   : > { %p965_p1 = pnand %p963_p7, %p951_p11  ;;  %p972_p12 = por %p971_p6, %p970_p2 }
  0x66   : > { %p966_p4 = pneg %p965_p1 }
  0x68   : > { %p973_p10 = pnand %p972_p12, %p966_p4 }
  0x6a   : > { %976 = shalt.err (!%p973_p10)
}
  0x6b   : > { %s1413_s0 = smov 4   ;;  %s1414_s2 = smov 64  }
  0x6c   : > { %806 = dma.hbm_to_vmem [thread:$0]  (!%p1245_p0), %s1393_s1, 1024, %s1241_s20, [#allocation7], %s1414_s2, %s1414_s2, %s1413_s0  }
  0x6d   : > { %p1415_p9 = scmp.ne.s32.totalorder %s1410_s11, 0 }
  0x6e   : > { %s211_s30 = sand.u32 (!%p1415_p9), 1, %s1201_s8   ;;  %s1301_s23 = sand.u32 (!%p1415_p9), 1, %s1051_s13  }
  0x6f   : > { %209 = sbr.rel (%p1415_p9) target bundleno = 394 (0x18a), region = 32  ;;  %s678_s25 = sshll.u32 (!%p1415_p9), %s1301_s23, 5 }
  0x70   : > { %s212_s21 = scalar_lea.sflag (!%p1415_p9), [#allocation4], %s211_s30  ;;  %s1306_s28 = scalar_lea.vmem (!%p1415_p9), [#allocation3], %s678_s25 }
  0x71   : > { %p1416_p11 = scmp.ne.s32.totalorder (!%p1415_p9), %s1407_s10, 0 }
  0x76   : > { %1030 = dma.done.wait (%p1416_p11), %s212_s21, 512  }
  0x77   : > { %1032 = vsyncadd (%p1416_p11), %s212_s21, 4294966784  ;;  %p1417_p0 = scmp.eq.s32.totalorder %s1201_s8, 0 }
  0x79   : > { %1034 = dma.done.wait (%p1417_p0), [#allocation7], 1024   ;;  %p1418_p5 = pmov %p1417_p0 }
  0x7a   : > { %s680_s11 = sshll.u32 %s1301_s23, 6 }
  0x7b   : > { %1036 = vsyncadd (%p1418_p5), [#allocation7], 4294966272  ;;  %s1317_s20 = scalar_lea.vmem [#allocation8], %s680_s11 }
  0x7c   : > { %1038 = dma.done.wait (%p1416_p11), %s212_s21, 1024  }
  0x7d   : > { %1040 = vsyncadd (%p1416_p11), %s212_s21, 4294966272  ;;  %v877_v0 = vld [vmem:[#allocation6] sm:$0xff]   ;;  %v878_v1 = vld [vmem:[#allocation6 + $0x8] sm:$0xff]   ;;  %s255_s8 = scalar_lea.vmem [#allocation9], %s678_s25  ;;  %s717_s19 = sshll.u32 %s1059_s15, 9 }
  0x7e   : > { %753 = vmatprep.subr.bf16.mxu0 %v877_v0  ;;  %777 = vmatprep.subr.bf16.mxu1 %v877_v0  ;;  %v879_v2 = vld [vmem:[#allocation6 + $0x10] sm:$0xff]   ;;  %v880_v3 = vld [vmem:[#allocation6 + $0x18] sm:$0xff]   ;;  %v885_v4 = vld [vmem:[%s1306_s28] sm:$0xff]   ;;  %s551_s10 = sshll.u32 %s255_s8, 4  ;;  %s1343_s15 = scalar_lea.hbm %s1395_s3, %s717_s19  ;;  %s1338_s10 = int_to_ptr.vmem [resolvable:$true] %s551_s10 }
  0x7f   : > { %754 = vmatpush3.bf16.msra.mxu0 %v877_v0  ;;  %785 = vmatpush3.bf16.msra.mxu1 %v877_v0  ;;  %v886_v5 = vld [vmem:[%s1306_s28 + $0x10] sm:$0xff]   ;;  %v881_v6 = vld [vmem:[#allocation6 + $0x20] sm:$0xff]   ;;  %v882_v7 = vld [vmem:[#allocation6 + $0x28] sm:$0xff]   ;;  %s538_s26 = scalar_lea.sflag [#allocation5], %s1301_s23  ;;  %s977_s6 = scalar_lea.vmem %s1338_s10, 512 }
  0x80   : > { %755 = vmatprep.subr.bf16.mxu0 %v878_v1  ;;  %778 = vmatprep.subr.bf16.mxu1 %v878_v1  ;;  %v883_v8 = vld [vmem:[#allocation6 + $0x30] sm:$0xff]   ;;  %v884_v9 = vld [vmem:[#allocation6 + $0x38] sm:$0xff]   ;;  %v887_v10 = vld [vmem:[%s1306_s28 + $0x8] sm:$0xff]   ;;  %p978_p8 = scmp.ne.s32.totalorder %s1338_s10, %s977_s6  ;;  %p1419_p13 = scmp.ne.s32.totalorder %s1408_s29, 0 }
  0x81   : > { %769 = vmatprep.mubr.bf16.mxu0 %v885_v4  ;;  %773 = vmatprep.mubr.bf16.mxu1 %v886_v5  ;;  %v888_v11 = vld [vmem:[%s1306_s28 + $0x18] sm:$0xff]   ;;  %v475_v12 = vld [vmem:[%s1317_s20 + $0x10] sm:$0xff]  ;;  %v473_v14 = vld [vmem:[%s1317_s20] sm:$0xff]  ;;  %s1076_s5 = smov [#allocation9]  }
  0x82   : > { %v479_v13 = vld [vmem:[%s1317_s20 + $0x30] sm:$0xff]  ;;  %v477_v15 = vld [vmem:[%s1317_s20 + $0x20] sm:$0xff]  ;;  %v476_v18 = vld [vmem:[%s1317_s20 + $0x18] sm:$0xff]  ;;  %p979_p3 = pnand %p978_p8, %p1419_p13  ;;  %s981_s0 = sshll.u32 %s1076_s5, 4  ;;  %s982_s0 = int_to_ptr.vmem [resolvable:$false] %s981_s0 }
  0x83   : > { %756 = vmatpush3.bf16.msra.mxu0 %v878_v1  ;;  %786 = vmatpush3.bf16.msra.mxu1 %v878_v1  ;;  %v480_v19 = vld [vmem:[%s1317_s20 + $0x38] sm:$0xff]  ;;  %v474_v24 = vld [vmem:[%s1317_s20 + $0x8] sm:$0xff]  ;;  %s983_s2 = scalar_lea.vmem %s982_s0, 1024  ;;  %p984_p1 = scmp.lt.s32.totalorder %s1338_s10, %s982_s0 }
  0x84   : > { %757 = vmatprep.subr.bf16.mxu0 %v879_v2  ;;  %779 = vmatprep.subr.bf16.mxu1 %v879_v2  ;;  %v478_v25 = vld [vmem:[%s1317_s20 + $0x28] sm:$0xff]  ;;  %p980_p7 = pneg %p979_p3  ;;  %p985_p4 = scmp.lt.s32.totalorder %s983_s2, %s977_s6 }
  0x86   : > { %p986_p2 = por %p985_p4, %p984_p1 }
  0x87   : > { %758 = vmatpush3.bf16.msra.mxu0 %v879_v2  ;;  %787 = vmatpush3.bf16.msra.mxu1 %v879_v2 }
  0x88   : > { %759 = vmatprep.subr.bf16.mxu0 %v880_v3  ;;  %780 = vmatprep.subr.bf16.mxu1 %v880_v3  ;;  %p987_p6 = pnand %p986_p2, %p980_p7 }
  0x8b   : > { %760 = vmatpush3.bf16.msra.mxu0 %v880_v3  ;;  %788 = vmatpush3.bf16.msra.mxu1 %v880_v3 }
  0x8c   : > { %761 = vmatprep.subr.bf16.mxu0 %v881_v6  ;;  %781 = vmatprep.subr.bf16.mxu1 %v881_v6 }
  0x8f   : > { %762 = vmatpush3.bf16.msra.mxu0 %v881_v6  ;;  %789 = vmatpush3.bf16.msra.mxu1 %v881_v6 }
  0x90   : > { %763 = vmatprep.subr.bf16.mxu0 %v882_v7  ;;  %782 = vmatprep.subr.bf16.mxu1 %v882_v7 }
  0x93   : > { %764 = vmatpush3.bf16.msra.mxu0 %v882_v7  ;;  %790 = vmatpush3.bf16.msra.mxu1 %v882_v7 }
  0x94   : > { %765 = vmatprep.subr.bf16.mxu0 %v883_v8  ;;  %783 = vmatprep.subr.bf16.mxu1 %v883_v8 }
  0x97   : > { %766 = vmatpush3.bf16.msra.mxu0 %v883_v8  ;;  %791 = vmatpush3.bf16.msra.mxu1 %v883_v8 }
  0x98   : > { %767 = vmatprep.subr.bf16.mxu0 %v884_v9  ;;  %784 = vmatprep.subr.bf16.mxu1 %v884_v9 }
  0x9b   : > { %768 = vmatpush3.bf16.msra.mxu0 %v884_v9  ;;  %792 = vmatpush3.bf16.msra.mxu1 %v884_v9 }
  0x9e   : > { %770 = vmatmul.mubr.bf16.vlgmr.msra.gmra.mrb[0].mxu0 %v887_v10  ;;  %774 = vmatmul.mubr.bf16.vlgmr.msra.gmra.mrb[0].mxu1 %v888_v11 }
 0x171   : > { %v771_v16 = vpop.f32.mrb[0].mxu0  ;;  %v775_v17 = vpop.f32.mrb[0].mxu1 }
 0x172   : > { %v483_v20 = vadd.f32 %v771_v16, %v475_v12  ;;  %v487_v21 = vadd.f32 %v775_v17, %v479_v13  ;;  %v415_v22 = vpop.f32.mrb[1].mxu0  ;;  %v431_v23 = vpop.f32.mrb[1].mxu1 }
 0x173   : > { %v481_v26 = vadd.f32 %v473_v14, %v415_v22  ;;  %v485_v27 = vadd.f32 %v477_v15, %v431_v23  ;;  %v772_v28 = vpop.f32.mrb[2].mxu0  ;;  %v776_v29 = vpop.f32.mrb[2].mxu1 }
 0x174   : > { %v484_v30 = vadd.f32 %v772_v28, %v476_v18  ;;  %v488_v31 = vadd.f32 %v776_v29, %v480_v19  ;;  %v418_v32 = vpop.f32.mrb[3].mxu0  ;;  %v434_v33 = vpop.f32.mrb[3].mxu1  ;;  %v491_v36 = vmax.f32 %v483_v20, 0.0  ;;  %v495_v37 = vmax.f32 %v487_v21, 0.0 }
 0x175   : > { %v482_v34 = vadd.f32 %v474_v24, %v418_v32  ;;  %v486_v35 = vadd.f32 %v478_v25, %v434_v33  ;;  %v489_v40 = vmax.f32 %v481_v26, 0.0  ;;  %v493_v41 = vmax.f32 %v485_v27, 0.0 }
 0x176   : > { %v492_v38 = vmax.f32 %v484_v30, 0.0  ;;  %v496_v39 = vmax.f32 %v488_v31, 0.0 }
 0x177   : > { %v490_v42 = vmax.f32 %v482_v34, 0.0  ;;  %v494_v43 = vmax.f32 %v486_v35, 0.0 }
 0x178   : > { %v726_v44 = vpack.c.bf16 %v492_v38, %v491_v36  ;;  %v736_v45 = vpack.c.bf16 %v496_v39, %v495_v37 }
 0x179   : > { %v721_v46 = vpack.c.bf16 %v490_v42, %v489_v40  ;;  %v731_v47 = vpack.c.bf16 %v494_v43, %v493_v41 }
 0x17a   : > { %738 = vst [vmem:[%s255_s8 + $0x8] sm:$0xff] %v726_v44   ;;  %740 = vst [vmem:[%s255_s8 + $0x18] sm:$0xff] %v736_v45  }
 0x17b   : > { %722 = vst [vmem:[%s255_s8] sm:$0xff] %v721_v46   ;;  %739 = vst [vmem:[%s255_s8 + $0x10] sm:$0xff] %v731_v47  }
 0x17c   : > { %990 = shalt.err (!%p987_p6)
}
 0x17d   : > { %s991_s7 = scalar_lea.hbm %s1343_s15, 512  ;;  %s995_s25 = scalar_lea.hbm %s1395_s3, 1024 }
 0x17e   : > { %p992_p12 = scmp.ne.s32.totalorder %s1343_s15, %s991_s7  ;;  %p996_p11 = scmp.lt.u32.totalorder %s1343_s15, %s1395_s3 }
 0x17f   : > { %p997_p0 = scmp.lt.u32.totalorder %s995_s25, %s991_s7  ;;  %p999_p8 = scmp.lt.u32.totalorder %s991_s7, %s1343_s15 }
 0x180   : > { %p993_p10 = pnand %p992_p12, %p1419_p13 }
 0x181   : > { %p998_p5 = por %p997_p0, %p996_p11 }
 0x182   : > { %p994_p9 = pneg %p993_p10 }
 0x183   : > { %p1000_p3 = por %p999_p8, %p998_p5 }
 0x185   : > { %p1001_p7 = pnand %p1000_p3, %p994_p9 }
 0x187   : > { %1004 = shalt.err (!%p1001_p7)
}
 0x188   : > { %s1077_s11 = smov 64   ;;  %s1078_s20 = smov 4  }
 0x189   : > { %801 = dma.vmem_to_hbm [thread:$0]  (%p1419_p13), %s1338_s10, 512, %s1343_s15, %s538_s26, %s1077_s11, %s1077_s11, %s1078_s20  }
 0x18a PF: > { %s566_s8 = sand.u32 1, %s1047_s12   ;;  %p1420_p1 = scmp.ne.s32.totalorder %s1409_s4, 0 }
 0x18b   : > { %p1421_p4 = scmp.ge.s32.totalorder %s1067_s17, 2  ;;  %s567_s19 = scalar_lea.sflag [#allocation5], %s566_s8 }
 0x18d   : > { %p815_p2 = pnand %p1421_p4, %p1420_p1 }
 0x18f   : > { %1042 = dma.done.wait (!%p815_p2), %s567_s19, 512  }
 0x190   : > { %1044 = vsyncadd (!%p815_p2), %s567_s19, 4294966784  ;;  %s20_s17 = sadd.s32 1, %s1067_s17   ;;  %s1422_s12 = smov %s1051_s13 }
 0x191   : > { %p17_p6 = scmp.ge.s32.totalorder %s20_s17, 4   ;;  %s1423_s13 = smov %s1055_s14 }
 0x192   : > { %s1424_s14 = smov %s1150_s24  ;;  %s1425_s15 = smov %s1063_s16 }
 0x193   : > { %s1426_s16 = smov %s1428_s18  ;;  %19 = sbr.rel (!%p17_p6) target bundleno = 10 (0xa), region = 101 }
 0x19a   :  { %572 = vsyncpa [#allocation4], 1 }
 0x19b   :  { %574 = vsyncpa [#allocation4 + $0x1], 1 }
 0x19c   :  { %575 = vsyncpa [#allocation7], 1 }
 0x19d   :  { %576 = vsyncpa [#allocation5], 1 }
 0x19e   :  { %578 = vsyncpa [#allocation5 + $0x1], 1 }

</bundles_post_ra>
